<compile_context>
chip_gen: v7x
topology: tpu7x:2x2x1
jax: 0.10.0
libtpu: 0.0.40
codegen_flags: <defaults>
</compile_context>

<pallas_src>
import functools

import jax
import jax.numpy as jnp
from jax.experimental import pallas as pl
from jax.experimental.pallas import tpu as pltpu

LANE = 128   # TPU lane width (last dim granularity)
SUB = 8      # TPU sublane granularity (second-to-last dim)
H1 = 128     # fc1 out features
H2 = 256     # fc2 out features


def _round_up(x, m):
    return (x + m - 1) // m * m


def w_generator_kernel(z_ref, w1_ref, b1_ref, w2_ref, b2_ref, w3_ref, b3_ref,
                       out_ref):
    cd = w1_ref.dtype  # compute (MXU input) dtype, typically bfloat16

    # Layer 1: (tb, K1) @ (K1, 128) -> +bias -> ReLU   (f32 accumulate)
    h1 = jnp.dot(z_ref[...], w1_ref[...], preferred_element_type=jnp.float32)
    h1 = jnp.maximum(h1 + b1_ref[...], 0.0)

    # Layer 2: (tb, 128) @ (128, 256) -> +bias -> ReLU
    h2 = jnp.dot(h1.astype(cd), w2_ref[...],
                 preferred_element_type=jnp.float32)
    h2 = jnp.maximum(h2 + b2_ref[...], 0.0)

    # Layer 3: (tb, 256) @ (256, Nout) -> +bias -> Tanh
    h3 = jnp.dot(h2.astype(cd), w3_ref[...],
                 preferred_element_type=jnp.float32)
    out_ref[...] = jnp.tanh(h3 + b3_ref[...]).astype(out_ref.dtype)


@functools.partial(jax.jit, static_argnames=("block_b",))
def w_generator_forward(z, params, *, block_b=None):
    """Fused MLP forward. z: (B, latent_dim) f32 -> (B, output_dim) f32."""
    w1, b1, w2, b2, w3, b3 = params
    B, latent_dim = z.shape
    output_dim = w3.shape[1]
    cd = jnp.bfloat16  # MXU input dtype; accumulation stays f32

    # Lane-dense padded sizes.
    K1 = _round_up(latent_dim, LANE)     # layer-1 contraction dim
    Nout = _round_up(output_dim, LANE)   # output lane width

    # Batch tile: multiple of 8 sublanes, capped at 256 rows so the per-step
    # VMEM footprint (z/out tiles double-buffered + weights + intermediates)
    # stays tiny (< 1 MiB) on every chip, including v7x's 64 MiB VMEM, and
    # real batches get >= 2 grid steps for the two v7x TensorCores.
    if block_b is None:
        block_b = min(_round_up(B, SUB), 256)
    block_b = _round_up(block_b, SUB)
    Bp = _round_up(B, block_b)
    num_tiles = Bp // block_b

    # Zero-pad inputs / weights to lane-dense shapes and cast to bf16.
    z_p = jnp.zeros((Bp, K1), cd).at[:B, :latent_dim].set(z.astype(cd))
    w1_p = jnp.zeros((K1, H1), cd).at[:latent_dim, :].set(w1.astype(cd))
    w2_c = w2.astype(cd)
    w3_p = jnp.zeros((H2, Nout), cd).at[:, :output_dim].set(w3.astype(cd))
    b1_c = b1.astype(jnp.float32)
    b2_c = b2.astype(jnp.float32)
    b3_p = jnp.zeros((1, Nout), jnp.float32).at[:, :output_dim].set(
        b3.astype(jnp.float32))

    # Advisory cost estimate for the XLA scheduler.
    flops = 2 * Bp * (K1 * H1 + H1 * H2 + H2 * Nout)
    bytes_accessed = (z_p.size * 2 + w1_p.size * 2 + w2_c.size * 2
                      + w3_p.size * 2 + (b1_c.size + b2_c.size + b3_p.size) * 4
                      + Bp * Nout * 4)
    cost = pl.CostEstimate(flops=flops, transcendentals=Bp * Nout,
                           bytes_accessed=bytes_accessed)

    full = lambda a: pl.BlockSpec(a.shape, lambda i: (0, 0))

    out_p = pl.pallas_call(
        w_generator_kernel,
        out_shape=jax.ShapeDtypeStruct((Bp, Nout), jnp.float32),
        grid_spec=pltpu.PrefetchScalarGridSpec(
            num_scalar_prefetch=0,
            grid=(num_tiles,),
            in_specs=[
                pl.BlockSpec((block_b, K1), lambda i: (i, 0)),   # z tile
                full(w1_p), full(b1_c),
                full(w2_c), full(b2_c),
                full(w3_p), full(b3_p),
            ],
            out_specs=pl.BlockSpec((block_b, Nout), lambda i: (i, 0)),
        ),
        compiler_params=pltpu.CompilerParams(
            dimension_semantics=("parallel",)),
        cost_estimate=cost,
    )(z_p, w1_p, b1_c, w2_c, b2_c, w3_p, b3_p)

    return out_p[:B, :output_dim]


def init_params(key, latent_dim, output_dim):
    """Deterministic parameter init (nn.Linear shapes, stored transposed)."""
    ks = jax.random.split(key, 6)

    def lin(kw, kb, fan_in, fan_out):
        bound = 1.0 / jnp.sqrt(fan_in)
        w = jax.random.uniform(kw, (fan_in, fan_out), jnp.float32, -bound, bound)
        b = jax.random.uniform(kb, (1, fan_out), jnp.float32, -bound, bound)
        return w, b

    w1, b1 = lin(ks[0], ks[1], latent_dim, H1)
    w2, b2 = lin(ks[2], ks[3], H1, H2)
    w3, b3 = lin(ks[4], ks[5], H2, output_dim)
    return (w1, b1, w2, b2, w3, b3)


def reference_forward(z, params):
    """Reference with the same bf16-input / f32-accumulate precision."""
    w1, b1, w2, b2, w3, b3 = params
    cd = jnp.bfloat16
    x = jnp.dot(z.astype(cd), w1.astype(cd),
                preferred_element_type=jnp.float32) + b1
    x = jnp.maximum(x, 0.0)
    x = jnp.dot(x.astype(cd), w2.astype(cd),
                preferred_element_type=jnp.float32) + b2
    x = jnp.maximum(x, 0.0)
    x = jnp.dot(x.astype(cd), w3.astype(cd),
                preferred_element_type=jnp.float32) + b3
    return jnp.tanh(x)


if __name__ == "__main__":
    latent_dim = 32
    output_dim = 64
    batch = 8

    key = jax.random.PRNGKey(0)
    kz, kp = jax.random.split(key)
    z = jax.random.normal(kz, (batch, latent_dim), jnp.float32)
    params = init_params(kp, latent_dim, output_dim)

    out = w_generator_forward(z, params)
    out = jax.block_until_ready(out)

    ref = reference_forward(z, params)
    assert out.shape == (batch, output_dim)
    assert jnp.allclose(out, ref, atol=1e-3, rtol=1e-3), (
        float(jnp.max(jnp.abs(out - ref))))

    print("KERNEL_OK")
</pallas_src>

<mosaic_0001>
module attributes {stable_mosaic.version = 11 : i64} {
  func.func @w_generator_kernel(%arg0: i32, %arg1: memref<8x128xbf16, #tpu.memory_space<vmem>>, %arg2: memref<128x128xbf16, #tpu.memory_space<vmem>>, %arg3: memref<1x128xf32, #tpu.memory_space<vmem>>, %arg4: memref<128x256xbf16, #tpu.memory_space<vmem>>, %arg5: memref<1x256xf32, #tpu.memory_space<vmem>>, %arg6: memref<256x128xbf16, #tpu.memory_space<vmem>>, %arg7: memref<1x128xf32, #tpu.memory_space<vmem>>, %arg8: memref<8x128xf32, #tpu.memory_space<vmem>>) attributes {dimension_semantics = [#tpu.dimension_semantics<parallel>], iteration_bounds = array<i64: 1>, scalar_prefetch = 0 : i64, scratch_operands = 0 : i64, tpu.core_type = #tpu.core_type<tc>, window_params = [{transform_indices = @transform_0, window_bounds = array<i64: 8, 128>}, {pipeline_mode = #tpu.pipeline_mode<synchronous>, transform_indices = @transform_1, window_bounds = array<i64: 128, 128>}, {pipeline_mode = #tpu.pipeline_mode<synchronous>, transform_indices = @transform_2, window_bounds = array<i64: 1, 128>}, {pipeline_mode = #tpu.pipeline_mode<synchronous>, transform_indices = @transform_3, window_bounds = array<i64: 128, 256>}, {pipeline_mode = #tpu.pipeline_mode<synchronous>, transform_indices = @transform_4, window_bounds = array<i64: 1, 256>}, {pipeline_mode = #tpu.pipeline_mode<synchronous>, transform_indices = @transform_5, window_bounds = array<i64: 256, 128>}, {pipeline_mode = #tpu.pipeline_mode<synchronous>, transform_indices = @transform_6, window_bounds = array<i64: 1, 128>}, {transform_indices = @transform_7, window_bounds = array<i64: 8, 128>}]} {
    %c0 = arith.constant 0 : index
    %c0_0 = arith.constant 0 : index
    %0 = vector.load %arg1[%c0, %c0_0] : memref<8x128xbf16, #tpu.memory_space<vmem>>, vector<8x128xbf16>
    %c0_1 = arith.constant 0 : index
    %c0_2 = arith.constant 0 : index
    %1 = vector.load %arg2[%c0_1, %c0_2] : memref<128x128xbf16, #tpu.memory_space<vmem>>, vector<128x128xbf16>
    %cst = arith.constant dense<0.000000e+00> : vector<8x128xf32>
    %2 = tpu.matmul %0, %1, %cst {dimension_numbers = #tpu.dot_dimension_numbers<[1], [0], [0], [1], [0, 0, 1, 1], [], []>} : vector<8x128xbf16>, vector<128x128xbf16>, vector<8x128xf32> -> vector<8x128xf32>
    %c0_3 = arith.constant 0 : index
    %c0_4 = arith.constant 0 : index
    %3 = vector.load %arg3[%c0_3, %c0_4] : memref<1x128xf32, #tpu.memory_space<vmem>>, vector<1x128xf32>
    %4 = vector.broadcast %3 : vector<1x128xf32> to vector<8x128xf32>
    %5 = arith.addf %2, %4 : vector<8x128xf32>
    %cst_5 = arith.constant 0.000000e+00 : f32
    %6 = vector.broadcast %cst_5 : f32 to vector<8x128xf32>
    %7 = arith.maximumf %5, %6 : vector<8x128xf32>
    %8 = arith.truncf %7 : vector<8x128xf32> to vector<8x128xbf16>
    %c0_6 = arith.constant 0 : index
    %c0_7 = arith.constant 0 : index
    %9 = vector.load %arg4[%c0_6, %c0_7] : memref<128x256xbf16, #tpu.memory_space<vmem>>, vector<128x256xbf16>
    %cst_8 = arith.constant dense<0.000000e+00> : vector<8x256xf32>
    %10 = tpu.matmul %8, %9, %cst_8 {dimension_numbers = #tpu.dot_dimension_numbers<[1], [0], [0], [1], [0, 0, 1, 1], [], []>} : vector<8x128xbf16>, vector<128x256xbf16>, vector<8x256xf32> -> vector<8x256xf32>
    %c0_9 = arith.constant 0 : index
    %c0_10 = arith.constant 0 : index
    %11 = vector.load %arg5[%c0_9, %c0_10] : memref<1x256xf32, #tpu.memory_space<vmem>>, vector<1x256xf32>
    %12 = vector.broadcast %11 : vector<1x256xf32> to vector<8x256xf32>
    %13 = arith.addf %10, %12 : vector<8x256xf32>
    %cst_11 = arith.constant 0.000000e+00 : f32
    %14 = vector.broadcast %cst_11 : f32 to vector<8x256xf32>
    %15 = arith.maximumf %13, %14 : vector<8x256xf32>
    %16 = arith.truncf %15 : vector<8x256xf32> to vector<8x256xbf16>
    %c0_12 = arith.constant 0 : index
    %c0_13 = arith.constant 0 : index
    %17 = vector.load %arg6[%c0_12, %c0_13] : memref<256x128xbf16, #tpu.memory_space<vmem>>, vector<256x128xbf16>
    %cst_14 = arith.constant dense<0.000000e+00> : vector<8x128xf32>
    %18 = tpu.matmul %16, %17, %cst_14 {dimension_numbers = #tpu.dot_dimension_numbers<[1], [0], [0], [1], [0, 0, 1, 1], [], []>} : vector<8x256xbf16>, vector<256x128xbf16>, vector<8x128xf32> -> vector<8x128xf32>
    %c0_15 = arith.constant 0 : index
    %c0_16 = arith.constant 0 : index
    %19 = vector.load %arg7[%c0_15, %c0_16] : memref<1x128xf32, #tpu.memory_space<vmem>>, vector<1x128xf32>
    %20 = vector.broadcast %19 : vector<1x128xf32> to vector<8x128xf32>
    %21 = arith.addf %18, %20 : vector<8x128xf32>
    %22 = math.tanh %21 : vector<8x128xf32>
    %c0_17 = arith.constant 0 : index
    %c0_18 = arith.constant 0 : index
    %23 = vector.load %arg8[%c0_17, %c0_18] : memref<8x128xf32, #tpu.memory_space<vmem>>, vector<8x128xf32>
    tpu.vector_store %arg8[%c0_17, %c0_18], %22 {strides = array<i32>} : memref<8x128xf32, #tpu.memory_space<vmem>>, vector<8x128xf32>,
    return
  }
  func.func @transform_0(%arg0: i32) -> (i32, i32) {
    %c0_i32 = arith.constant 0 : i32
    %c0_i32_0 = arith.constant 0 : i32
    return %arg0, %c0_i32 : i32, i32
  }
  func.func @transform_1(%arg0: i32) -> (i32, i32) {
    %c0_i32 = arith.constant 0 : i32
    %c0_i32_0 = arith.constant 0 : i32
    %c0_i32_1 = arith.constant 0 : i32
    return %c0_i32, %c0_i32_0 : i32, i32
  }
  func.func @transform_2(%arg0: i32) -> (i32, i32) {
    %c0_i32 = arith.constant 0 : i32
    %c0_i32_0 = arith.constant 0 : i32
    %c0_i32_1 = arith.constant 0 : i32
    return %c0_i32, %c0_i32_0 : i32, i32
  }
  func.func @transform_3(%arg0: i32) -> (i32, i32) {
    %c0_i32 = arith.constant 0 : i32
    %c0_i32_0 = arith.constant 0 : i32
    %c0_i32_1 = arith.constant 0 : i32
    return %c0_i32, %c0_i32_0 : i32, i32
  }
  func.func @transform_4(%arg0: i32) -> (i32, i32) {
    %c0_i32 = arith.constant 0 : i32
    %c0_i32_0 = arith.constant 0 : i32
    %c0_i32_1 = arith.constant 0 : i32
    return %c0_i32, %c0_i32_0 : i32, i32
  }
  func.func @transform_5(%arg0: i32) -> (i32, i32) {
    %c0_i32 = arith.constant 0 : i32
    %c0_i32_0 = arith.constant 0 : i32
    %c0_i32_1 = arith.constant 0 : i32
    return %c0_i32, %c0_i32_0 : i32, i32
  }
  func.func @transform_6(%arg0: i32) -> (i32, i32) {
    %c0_i32 = arith.constant 0 : i32
    %c0_i32_0 = arith.constant 0 : i32
    %c0_i32_1 = arith.constant 0 : i32
    return %c0_i32, %c0_i32_0 : i32, i32
  }
  func.func @transform_7(%arg0: i32) -> (i32, i32) {
    %c0_i32 = arith.constant 0 : i32
    %c0_i32_0 = arith.constant 0 : i32
    return %arg0, %c0_i32 : i32, i32
  }
}

</mosaic_0001>

<bundles_post_ra>
// kernel: w_generator_forward.1
= control target key start
LH: loop header
LB: loop body
LE: loop exit
PB: predicated region body
PF: predicated region fallthrough
CT: control target
= control target key end

     0   :  { %v657_v1 = vmov 0.0   ;;  %vm658_vm0 = vmmov 0   ;;  %s845_s0 = inlined_call_operand.vmem [shape: bf16[8,128], index: 0, kind: input, shape index: {}]   ;;  %s846_s1 = inlined_call_operand.vmem [shape: bf16[128,128], index: 1, kind: input, shape index: {}]   ;;  %s847_s2 = inlined_call_operand.vmem [shape: f32[1,128], index: 2, kind: input, shape index: {}]   ;;  %s848_s3 = inlined_call_operand.vmem [shape: bf16[128,256], index: 3, kind: input, shape index: {}]   ;;  %s849_s4 = inlined_call_operand.vmem [shape: f32[1,256], index: 4, kind: input, shape index: {}]   ;;  %s850_s5 = inlined_call_operand.vmem [shape: bf16[256,128], index: 5, kind: input, shape index: {}]   ;;  %s851_s6 = inlined_call_operand.vmem [shape: f32[1,128], index: 6, kind: input, shape index: {}]   ;;  %s852_s7 = inlined_call_operand.hbm [shape: f32[8,128], index: 7, kind: output, shape index: {}]  }
   0x1   :  { %v583_v0 = vld [vmem:[%s846_s1] sm:$0xff]   ;;  %559 = vmatprep.subr.bf16.mxu0 %v657_v1  ;;  %v584_v2 = vld [vmem:[%s846_s1 + $0x8] sm:$0xff]   ;;  %575 = vmatprep.mubr.msk.bf16.mxu0 %vm658_vm0, %v657_v1  ;;  %v585_v3 = vld [vmem:[%s846_s1 + $0x10] sm:$0xff]  }
   0x2   :  { %560 = vmatpush3.bf16.msra.mxu0 %v583_v0  ;;  %v591_v4 = vld [vmem:[%s848_s3 + $0x4] ss:$8 sps:$4 sm:$0xff]   ;;  %v593_v5 = vld [vmem:[%s848_s3] ss:$8 sps:$4 sm:$0xff]   ;;  %v586_v6 = vld [vmem:[%s846_s1 + $0x18] sm:$0xff]  }
   0x3   :  { %561 = vmatprep.subr.bf16.mxu0 %v657_v1  ;;  %v594_v7 = vld [vmem:[%s848_s3 + $0x14] ss:$8 sps:$4 sm:$0xff]   ;;  %250 = vmatprep.subr.bf16.mxu1 %v591_v4  ;;  %v596_v8 = vld [vmem:[%s848_s3 + $0x10] ss:$8 sps:$4 sm:$0xff]   ;;  %v597_v9 = vld [vmem:[%s848_s3 + $0x24] ss:$8 sps:$4 sm:$0xff]  }
   0x4   :  { %251 = vmatpush1.bf16.msra.mxu1 %v593_v5  ;;  %v587_v10 = vld [vmem:[%s846_s1 + $0x20] sm:$0xff]   ;;  %v588_v12 = vld [vmem:[%s846_s1 + $0x28] sm:$0xff]   ;;  %v600_v13 = vld [vmem:[%s848_s3 + $0x34] ss:$8 sps:$4 sm:$0xff]  }
   0x5   :  { %252 = vmatprep.subr.bf16.mxu1 %v594_v7  ;;  %v599_v11 = vld [vmem:[%s848_s3 + $0x20] ss:$8 sps:$4 sm:$0xff]   ;;  %v602_v14 = vld [vmem:[%s848_s3 + $0x30] ss:$8 sps:$4 sm:$0xff]   ;;  %v603_v15 = vld [vmem:[%s848_s3 + $0x44] ss:$8 sps:$4 sm:$0xff]  }
   0x6   :  { %562 = vmatpush3.bf16.msra.mxu0 %v584_v2  ;;  %v589_v16 = vld [vmem:[%s846_s1 + $0x30] sm:$0xff]   ;;  %v605_v17 = vld [vmem:[%s848_s3 + $0x40] ss:$8 sps:$4 sm:$0xff]   ;;  %v590_v19 = vld [vmem:[%s846_s1 + $0x38] sm:$0xff]  }
   0x7   :  { %563 = vmatprep.subr.bf16.mxu0 %v657_v1  ;;  %v606_v18 = vld [vmem:[%s848_s3 + $0x54] ss:$8 sps:$4 sm:$0xff]   ;;  %v608_v20 = vld [vmem:[%s848_s3 + $0x50] ss:$8 sps:$4 sm:$0xff]   ;;  %v609_v21 = vld [vmem:[%s848_s3 + $0x64] ss:$8 sps:$4 sm:$0xff]  }
   0x8   :  { %253 = vmatpush1.bf16.msra.mxu1 %v596_v8 }
   0x9   :  { %254 = vmatprep.subr.bf16.mxu1 %v597_v9 }
   0xa   :  { %564 = vmatpush3.bf16.msra.mxu0 %v585_v3 }
   0xb   :  { %565 = vmatprep.subr.bf16.mxu0 %v657_v1 }
   0xc   :  { %255 = vmatpush1.bf16.msra.mxu1 %v599_v11 }
   0xd   :  { %256 = vmatprep.subr.bf16.mxu1 %v600_v13 }
   0xe   :  { %566 = vmatpush3.bf16.msra.mxu0 %v586_v6 }
   0xf   :  { %567 = vmatprep.subr.bf16.mxu0 %v657_v1 }
  0x10   :  { %257 = vmatpush1.bf16.msra.mxu1 %v602_v14 }
  0x11   :  { %258 = vmatprep.subr.bf16.mxu1 %v603_v15 }
  0x12   :  { %568 = vmatpush3.bf16.msra.mxu0 %v587_v10 }
  0x13   :  { %569 = vmatprep.subr.bf16.mxu0 %v657_v1 }
  0x14   :  { %259 = vmatpush1.bf16.msra.mxu1 %v605_v17 }
  0x15   :  { %260 = vmatprep.subr.bf16.mxu1 %v606_v18 }
  0x16   :  { %570 = vmatpush3.bf16.msra.mxu0 %v588_v12 }
  0x17   :  { %571 = vmatprep.subr.bf16.mxu0 %v657_v1 }
  0x1a   :  { %572 = vmatpush3.bf16.msra.mxu0 %v589_v16 }
  0x1b   :  { %573 = vmatprep.subr.bf16.mxu0 %v657_v1 }
  0x1c   :  { %12 = vsyncpa [#allocation3], 0  ;;  %v28_v22 = vld [vmem:[%s845_s0] sm:$0xf]  ;;  %261 = vmatpush1.bf16.msra.mxu1 %v608_v20  ;;  %v612_v24 = vld [vmem:[%s848_s3 + $0x74] ss:$8 sps:$4 sm:$0xff]   ;;  %v160_v51 = vlaneseq }
  0x1d   :  { %262 = vmatprep.subr.bf16.mxu1 %v609_v21  ;;  %v611_v23 = vld [vmem:[%s848_s3 + $0x60] ss:$8 sps:$4 sm:$0xff]   ;;  %v614_v25 = vld [vmem:[%s848_s3 + $0x70] ss:$8 sps:$4 sm:$0xff]   ;;  %v659_v26 = vmov 0  }
  0x1e   :  { %574 = vmatpush3.bf16.msra.mxu0 %v590_v19  ;;  %282 = vmatprep.mubr.bf16.mxu1 %v659_v26  ;;  %v615_v27 = vld [vmem:[%s850_s5 + $0x40] sm:$0xff]   ;;  %v617_v29 = vld [vmem:[%s850_s5 + $0x48] sm:$0xff]   ;;  %v619_v31 = vld [vmem:[%s850_s5 + $0x50] sm:$0xff]   ;;  %v161_v52 = vshrl.u32 %v160_v51, 7 }
  0x1f   :  { %v616_v28 = vld [vmem:[%s850_s5] sm:$0xff]   ;;  %537 = vmatprep.subr.bf16.mxu0 %v615_v27  ;;  %v618_v30 = vld [vmem:[%s850_s5 + $0x8] sm:$0xff]   ;;  %v620_v32 = vld [vmem:[%s850_s5 + $0x10] sm:$0xff]  }
  0x20   :  { %263 = vmatpush1.bf16.msra.mxu1 %v611_v23  ;;  %v621_v33 = vld [vmem:[%s850_s5 + $0x58] sm:$0xff]   ;;  %v623_v35 = vld [vmem:[%s850_s5 + $0x60] sm:$0xff]   ;;  %v625_v37 = vld [vmem:[%s850_s5 + $0x68] sm:$0xff]   ;;  %v162_v53 = vsub.s32 0, %v161_v52  ;;  %v166_v55 = vsub.s32 1, %v161_v52 }
  0x21   :  { %576 = vmatmul.mubr.bf16.vlgmr.msra.gmra.mrb[0].mxu0 %v28_v22  ;;  %264 = vmatprep.subr.bf16.mxu1 %v612_v24  ;;  %v622_v34 = vld [vmem:[%s850_s5 + $0x18] sm:$0xff]   ;;  %v624_v36 = vld [vmem:[%s850_s5 + $0x20] sm:$0xff]   ;;  %v626_v38 = vld [vmem:[%s850_s5 + $0x28] sm:$0xff]  }
  0x22   :  { %538 = vmatpush3.bf16.msra.mxu0 %v616_v28  ;;  %v486_v39 = vld [vmem:[%s847_s2] ss:$0 sm:$0xff]  ;;  %v627_v47 = vld [vmem:[%s850_s5 + $0x70] sm:$0xff]   ;;  %v629_v49 = vld [vmem:[%s850_s5 + $0x78] sm:$0xff]  }
  0x23   :  { %539 = vmatprep.subr.bf16.mxu0 %v617_v29  ;;  %v628_v48 = vld [vmem:[%s850_s5 + $0x30] sm:$0xff]   ;;  %v630_v50 = vld [vmem:[%s850_s5 + $0x38] sm:$0xff]   ;;  %v158_v54 = vld [vmem:[%s849_s4] sm:$0x3]  ;;  %s660_s4 = smov [#allocation2]  }
  0x24   :  { %265 = vmatpush1.bf16.msra.mxu1 %v614_v25  ;;  %v163_v56 = vrot.slane %v158_v54, %v162_v53  ;;  %v167_v57 = vrot.slane %v158_v54, %v166_v55  ;;  %v511_v5 = vld [vmem:[%s851_s6] ss:$0 sm:$0xff]  ;;  %s478_s12 = sshll.u32 %s660_s4, 4  ;;  %s479_s12 = int_to_ptr.vmem [resolvable:$true] %s478_s12 }
  0x25   :  { %s633_s13 = scalar_lea.vmem %s479_s12, 128  ;;  %p638_p1 = scmp.lt.s32.totalorder %s479_s12, %s479_s12 }
  0x26   :  { %540 = vmatpush3.bf16.msra.mxu0 %v618_v30  ;;  %p634_p0 = scmp.ne.s32.totalorder %s479_s12, %s633_s13  ;;  %p639_p2 = scmp.lt.s32.totalorder %s633_s13, %s633_s13 }
  0x27   :  { %541 = vmatprep.subr.bf16.mxu0 %v619_v31 }
  0x28   :  { %p640_p3 = por %p639_p2, %p638_p1 }
  0x2a   :  { %542 = vmatpush3.bf16.msra.mxu0 %v620_v32  ;;  %p641_p4 = pnand %p640_p3, %p634_p0 }
  0x2b   :  { %543 = vmatprep.subr.bf16.mxu0 %v621_v33 }
  0x2e   :  { %544 = vmatpush3.bf16.msra.mxu0 %v622_v34 }
  0x2f   :  { %545 = vmatprep.subr.bf16.mxu0 %v623_v35 }
  0x32   :  { %546 = vmatpush3.bf16.msra.mxu0 %v624_v36 }
  0x33   :  { %547 = vmatprep.subr.bf16.mxu0 %v625_v37 }
  0x36   :  { %548 = vmatpush3.bf16.msra.mxu0 %v626_v38 }
  0x37   :  { %549 = vmatprep.subr.bf16.mxu0 %v627_v47 }
  0x3a   :  { %550 = vmatpush3.bf16.msra.mxu0 %v628_v48 }
  0x3b   :  { %551 = vmatprep.subr.bf16.mxu0 %v629_v49 }
  0x3e   :  { %552 = vmatpush3.bf16.msra.mxu0 %v630_v50 }
  0xf4   :  { %v134_v40 = vpop.f32.mrb[0].mxu0 }
  0xf5   :  { %v135_v41 = vadd.f32 %v486_v39, %v134_v40  ;;  %v577_v42 = vpop.f32.mrb[1].mxu0 }
  0xf6   :  { %v137_v43 = vpop.f32.mrb[2].mxu0 }
  0xf7   :  { %v140_v44 = vmax.f32 %v135_v41, 0.0  ;;  %v578_v45 = vpop.f32.mrb[3].mxu0 }
  0xf9   :  { %v141_v46 = vpack.c.bf16 %v140_v44, %v140_v44 }
  0xfb   :  { %283 = vmatmul.mubr.bf16.vlgmr.msra.gmra.mrb[0].mxu1 %v141_v46 }
 0x1ce   :  { %v284_v58 = vpop.f32.mrb[0].mxu1 }
 0x1cf   :  { %v285_v59 = vadd.f32 %v284_v58, %v163_v56  ;;  %v286_v60 = vpop.f32.mrb[1].mxu1 }
 0x1d0   :  { %v287_v61 = vadd.f32 %v286_v60, %v167_v57  ;;  %v288_v62 = vpop.f32.mrb[2].mxu1 }
 0x1d1   :  { %v291_v63 = vmax.f32 %v285_v59, 0.0  ;;  %v289_v0 = vpop.f32.mrb[3].mxu1 }
 0x1d2   :  { %v292_v1 = vmax.f32 %v287_v61, 0.0 }
 0x1d3   :  { %v293_v3 = vpack.c.bf16 %v291_v63, %v291_v63 }
 0x1d4   :  { %v294_v2 = vpack.c.bf16 %v292_v1, %v292_v1 }
 0x1d6   :  { %462 = vmatprep.mubr.bf16.mxu0 %v294_v2 }
 0x1d7   :  { %463 = vmatmul.mubr.bf16.vlgmr.msra.gmra.mrb[4].mxu0 %v293_v3 }
 0x2aa   :  { %v553_v4 = vpop.f32.mrb[4].mxu0 }
 0x2ab   :  { %v554_v6 = vpop.f32.mrb[5].mxu0 }
 0x2ac   :  { %v555_v7 = vadd.f32 %v554_v6, %v553_v4  ;;  %v556_v8 = vpop.f32.mrb[6].mxu0 }
 0x2ad   :  { %v557_v9 = vpop.f32.mrb[7].mxu0 }
 0x2ae   :  { %v465_v10 = vadd.f32 %v555_v7, %v511_v5 }
 0x2b0   :  { %631 = vtanh.f32 %v465_v10 }
 0x2ba   :  { %v632_v11 = vpop.eup %631 }
 0x2bb   :  { %471 = vst [vmem:[#allocation2] sm:$0xff] %v632_v11 }
 0x2bc   :  { %644 = shalt.err (!%p641_p4)
}
 0x2bd   :  { %s645_s15 = scalar_lea.hbm %s852_s7, 128 }
 0x2be   :  { %p646_p5 = scmp.ne.s32.totalorder %s852_s7, %s645_s15  ;;  %p649_p6 = scmp.lt.u32.totalorder %s645_s15, %s852_s7 }
 0x2c0   :  { %p651_p7 = pnand %p649_p6, %p646_p5 }
 0x2c2   :  { %654 = shalt.err (!%p651_p7)
}
 0x2c3   :  { %481 = dma.vmem_to_hbm [thread:$0]  %s479_s12, 128, %s852_s7, [#allocation3]  }
 0x2c4   :  { %655 = dma.done.wait [#allocation3], 128  }
 0x2c5   :  { %656 = vsyncadd [#allocation3], 4294967168 }
 0x2c6   :  { %485 = vsyncpa [#allocation3], 1 }

</bundles_post_ra>
